<compile_context>
chip_gen: v6e
topology: v6e:2x2x1
jax: 0.10.0
libtpu: 0.0.40
codegen_flags: <defaults>
</compile_context>

<pallas_src>
import functools

import jax
import jax.numpy as jnp
from jax.experimental import pallas as pl
from jax.experimental.pallas import tpu as pltpu


def _round_up(n, m):
    return ((n + m - 1) // m) * m


# ----------------------------- Pallas kernel ------------------------------- #
def vae_kernel(
    x_ref, eps_ref,
    w_enc_ref, b_enc_ref,
    w_heads_ref, b_heads_ref,
    w_d1_ref,
    w_d2_ref, b_d2_ref,
    recon_ref, slab_ref,
    *, latent_size, slab_width,
):
    x = x_ref[...]                       # (TB, input_size) bf16
    eps = eps_ref[...]                   # (TB, latent_size) f32

    # ---- encode (bf16 MXU, f32 accumulate) ----
    h1 = jnp.dot(x, w_enc_ref[...], preferred_element_type=jnp.float32) + b_enc_ref[...]
    h1 = jnp.maximum(h1, 0.0).astype(jnp.bfloat16)          # ReLU, re-feed MXU in bf16

    # ---- fused heads: one 256-lane MXU pass ----
    # lanes [0, slab_width)                : [logvar | mu | pred(folded) | 0-pad]
    # lanes [slab_width, slab_width+dec)   : deterministic half of decode layer 1
    #                                        (mu @ w_d1 + b_d1, folded through w_mu)
    heads = (jnp.dot(h1, w_heads_ref[...], preferred_element_type=jnp.float32)
             + b_heads_ref[...])

    logvar = heads[:, :latent_size]      # lane-0 aligned -> no XLU rotate before exp
    d1_det = heads[:, slab_width:]       # starts on a 128-lane boundary

    # ---- reparameterize + stochastic half of decode layer 1 (f32 elementwise) ----
    # z @ w_d1 = (mu @ w_d1) + (eps*std) @ w_d1 ; the first term is d1_det.
    std = jnp.exp(0.5 * logvar)
    es = (eps * std).astype(jnp.bfloat16)

    h3 = d1_det + jnp.dot(es, w_d1_ref[...], preferred_element_type=jnp.float32)
    h3 = jnp.maximum(h3, 0.0).astype(jnp.bfloat16)

    recon = jax.nn.sigmoid(
        jnp.dot(h3, w_d2_ref[...], preferred_element_type=jnp.float32) + b_d2_ref[...]
    )

    recon_ref[...] = recon.astype(recon_ref.dtype)                 # lane-dense
    slab_ref[...] = heads[:, :slab_width].astype(slab_ref.dtype)   # lane-dense 128-slab


# -------------------------- Parameter fusion -------------------------------- #
def fuse_params(p, latent_size, n_output, matmul_dtype=jnp.bfloat16):
    """Fold the activation-free predictor chain and the deterministic half of
    decode layer 1 through the mu head, concatenating everything into one
    lane-dense heads weight. Done once, outside the kernel. Weights are stored
    in bf16 for the MXU; biases stay f32 (added after the f32 accumulate)."""
    # predictor chain: pred = mu @ w_pc + b_pc
    w_pc = p["w_p1"] @ p["w_p2"] @ p["w_p3"]
    b_pc = p["b_p1"] @ p["w_p2"] @ p["w_p3"] + p["b_p2"] @ p["w_p3"] + p["b_p3"]
    # fold through the mu head: pred = h1 @ (w_mu @ w_pc) + (b_mu @ w_pc + b_pc)
    w_pred = p["w_mu"] @ w_pc
    b_pred = p["b_mu"] @ w_pc + b_pc
    # deterministic half of decode layer 1: mu @ w_d1 + b_d1
    w_d1det = p["w_mu"] @ p["w_d1"]
    b_d1det = p["b_mu"] @ p["w_d1"] + p["b_d1"]

    enc_dim = p["w_mu"].shape[0]
    used = 2 * latent_size + n_output
    slab_width = _round_up(used, 128)
    pad = slab_width - used

    # heads layout: [logvar | mu | pred | 0-pad | d1_det]
    w_heads = jnp.concatenate(
        [p["w_lv"], p["w_mu"], w_pred,
         jnp.zeros((enc_dim, pad), jnp.float32), w_d1det], axis=1)
    b_heads = jnp.concatenate(
        [p["b_lv"], p["b_mu"], b_pred,
         jnp.zeros((1, pad), jnp.float32), b_d1det], axis=1)

    md = matmul_dtype
    return {
        "w_enc": p["w_enc"].astype(md), "b_enc": p["b_enc"],
        "w_heads": w_heads.astype(md), "b_heads": b_heads,
        "w_d1": p["w_d1"].astype(md),
        "w_d2": p["w_d2"].astype(md), "b_d2": p["b_d2"],
        "slab_width": slab_width,
    }


# ------------------------------ Wrapper ------------------------------------ #
def vae_forward(x, eps, fused, latent_size, n_output, recon_dtype=jnp.float32):
    """Full VAE forward pass in one Pallas kernel.

    Returns (recon, mu, logvar, predictions) matching the PyTorch module.
    """
    B, input_size = x.shape
    slab_width = fused["slab_width"]

    # ---- batch tiling ----
    # Large tiles amortize the ~0.35 us per-grid-step overhead; for large B
    # keep >= 2 grid steps so the "parallel" axis can split across v7x's 2 TCs.
    if B >= 512:
        TB = min(_round_up(pl.cdiv(B, 2), 8), 1024)
    else:
        TB = _round_up(B, 8)             # single step, sublane-aligned
    Bp = _round_up(B, TB)
    if Bp != B:
        # zero-pad ragged tiles so padding rows stay finite through exp/sigmoid
        x = jnp.pad(x, ((0, Bp - B), (0, 0)))
        eps = jnp.pad(eps, ((0, Bp - B), (0, 0)))
    x = x.astype(fused["w_enc"].dtype)   # bf16: halves input DMA, feeds MXU natively
    grid = (Bp // TB,)

    batch_map = lambda i: (i, 0)
    const_map = lambda i: (0, 0)         # weights stay VMEM-resident, no per-step DMA

    in_specs = [
        pl.BlockSpec((TB, input_size), batch_map),        # x
        pl.BlockSpec((TB, latent_size), batch_map),       # eps
        pl.BlockSpec(fused["w_enc"].shape, const_map),
        pl.BlockSpec(fused["b_enc"].shape, const_map),
        pl.BlockSpec(fused["w_heads"].shape, const_map),
        pl.BlockSpec(fused["b_heads"].shape, const_map),
        pl.BlockSpec(fused["w_d1"].shape, const_map),
        pl.BlockSpec(fused["w_d2"].shape, const_map),
        pl.BlockSpec(fused["b_d2"].shape, const_map),
    ]
    out_specs = [
        pl.BlockSpec((TB, input_size), batch_map),        # recon
        pl.BlockSpec((TB, slab_width), batch_map),        # packed [logvar|mu|pred|0]
    ]
    out_shapes = (
        jax.ShapeDtypeStruct((Bp, input_size), recon_dtype),
        jax.ShapeDtypeStruct((Bp, slab_width), jnp.float32),
    )

    fn = pl.pallas_call(
        functools.partial(vae_kernel, latent_size=latent_size, slab_width=slab_width),
        grid=grid,
        in_specs=in_specs,
        out_specs=out_specs,
        out_shape=out_shapes,
        compiler_params=pltpu.CompilerParams(
            dimension_semantics=("parallel",),
        ),
    )
    recon, slab = fn(
        x, eps,
        fused["w_enc"], fused["b_enc"],
        fused["w_heads"], fused["b_heads"],
        fused["w_d1"],
        fused["w_d2"], fused["b_d2"],
    )

    recon = recon[:B]
    slab = slab[:B]
    logvar = slab[:, :latent_size]
    mu = slab[:, latent_size:2 * latent_size]
    pred = slab[:, 2 * latent_size:2 * latent_size + n_output]
    return recon, mu, logvar, pred


# ------------------------- Deterministic parameters ------------------------ #
def init_params(key, input_size, latent_size, n_output,
                encoder=(128,), decoder=(128,), predictor=(128, 128)):
    """Deterministic synthetic init, mimicking PyTorch Linear's U(-1/sqrt(fan_in), +)."""
    def linear(key, fan_in, fan_out):
        kw, kb = jax.random.split(key)
        bound = 1.0 / jnp.sqrt(fan_in)
        w = jax.random.uniform(kw, (fan_in, fan_out), jnp.float32, -bound, bound)  # (in, out)
        b = jax.random.uniform(kb, (1, fan_out), jnp.float32, -bound, bound)
        return w, b

    keys = jax.random.split(key, 9)
    params = {}
    params["w_enc"], params["b_enc"] = linear(keys[0], input_size, encoder[0])
    params["w_mu"], params["b_mu"] = linear(keys[1], encoder[-1], latent_size)
    params["w_lv"], params["b_lv"] = linear(keys[2], encoder[-1], latent_size)
    params["w_d1"], params["b_d1"] = linear(keys[3], latent_size, decoder[0])
    params["w_d2"], params["b_d2"] = linear(keys[4], decoder[-1], input_size)
    params["w_p1"], params["b_p1"] = linear(keys[5], latent_size, predictor[0])
    params["w_p2"], params["b_p2"] = linear(keys[6], predictor[0], predictor[1])
    params["w_p3"], params["b_p3"] = linear(keys[7], predictor[1], n_output)
    return params


# ------------------------- Pure-JAX reference ------------------------------ #
def vae_forward_ref(x, eps, p):
    h1 = jnp.maximum(x @ p["w_enc"] + p["b_enc"], 0.0)
    mu = h1 @ p["w_mu"] + p["b_mu"]
    logvar = h1 @ p["w_lv"] + p["b_lv"]
    z = mu + eps * jnp.exp(0.5 * logvar)
    h3 = jnp.maximum(z @ p["w_d1"] + p["b_d1"], 0.0)
    recon = jax.nn.sigmoid(h3 @ p["w_d2"] + p["b_d2"])
    pred = ((mu @ p["w_p1"] + p["b_p1"]) @ p["w_p2"] + p["b_p2"]) @ p["w_p3"] + p["b_p3"]
    return recon, mu, logvar, pred


if __name__ == "__main__":
    B = 8
    INPUT_SIZE = 256
    LATENT_SIZE = 32
    N_OUTPUT = 3

    key = jax.random.PRNGKey(0)
    k_x, k_eps, k_params = jax.random.split(key, 3)

    x = jax.random.normal(k_x, (B, INPUT_SIZE), jnp.float32)
    # torch.randn_like(std) sampled outside the kernel (deterministic here).
    eps = jax.random.normal(k_eps, (B, LATENT_SIZE), jnp.float32)
    params = init_params(k_params, INPUT_SIZE, LATENT_SIZE, N_OUTPUT)
    fused = fuse_params(params, LATENT_SIZE, N_OUTPUT)

    recon, mu, logvar, pred = vae_forward(x, eps, fused, LATENT_SIZE, N_OUTPUT)
    jax.block_until_ready((recon, mu, logvar, pred))

    # Correctness check against f32 pure-JAX reference (un-fused params).
    # Tolerances account for bf16 MXU inputs + algebraic folds (different FP association).
    r_ref, mu_ref, lv_ref, p_ref = vae_forward_ref(x, eps, params)
    assert jnp.allclose(recon, r_ref, atol=2e-2, rtol=2e-2)
    assert jnp.allclose(mu, mu_ref, atol=2e-2, rtol=2e-2)
    assert jnp.allclose(logvar, lv_ref, atol=2e-2, rtol=2e-2)
    assert jnp.allclose(pred, p_ref, atol=2e-2, rtol=2e-2)

    print("KERNEL_OK")
</pallas_src>

<mosaic_0001>
module attributes {stable_mosaic.version = 11 : i64} {
  func.func @vae_kernel(%arg0: i32, %arg1: memref<8x256xbf16, #tpu.memory_space<vmem>>, %arg2: memref<8x32xf32, #tpu.memory_space<vmem>>, %arg3: memref<256x128xbf16, #tpu.memory_space<vmem>>, %arg4: memref<1x128xf32, #tpu.memory_space<vmem>>, %arg5: memref<128x256xbf16, #tpu.memory_space<vmem>>, %arg6: memref<1x256xf32, #tpu.memory_space<vmem>>, %arg7: memref<32x128xbf16, #tpu.memory_space<vmem>>, %arg8: memref<128x256xbf16, #tpu.memory_space<vmem>>, %arg9: memref<1x256xf32, #tpu.memory_space<vmem>>, %arg10: memref<8x256xf32, #tpu.memory_space<vmem>>, %arg11: memref<8x128xf32, #tpu.memory_space<vmem>>) attributes {dimension_semantics = [#tpu.dimension_semantics<parallel>], iteration_bounds = array<i64: 1>, scalar_prefetch = 0 : i64, scratch_operands = 0 : i64, tpu.core_type = #tpu.core_type<tc>, window_params = [{transform_indices = @transform_0, window_bounds = array<i64: 8, 256>}, {transform_indices = @transform_1, window_bounds = array<i64: 8, 32>}, {pipeline_mode = #tpu.pipeline_mode<synchronous>, transform_indices = @transform_2, window_bounds = array<i64: 256, 128>}, {pipeline_mode = #tpu.pipeline_mode<synchronous>, transform_indices = @transform_3, window_bounds = array<i64: 1, 128>}, {pipeline_mode = #tpu.pipeline_mode<synchronous>, transform_indices = @transform_4, window_bounds = array<i64: 128, 256>}, {pipeline_mode = #tpu.pipeline_mode<synchronous>, transform_indices = @transform_5, window_bounds = array<i64: 1, 256>}, {pipeline_mode = #tpu.pipeline_mode<synchronous>, transform_indices = @transform_6, window_bounds = array<i64: 32, 128>}, {pipeline_mode = #tpu.pipeline_mode<synchronous>, transform_indices = @transform_7, window_bounds = array<i64: 128, 256>}, {pipeline_mode = #tpu.pipeline_mode<synchronous>, transform_indices = @transform_8, window_bounds = array<i64: 1, 256>}, {transform_indices = @transform_9, window_bounds = array<i64: 8, 256>}, {transform_indices = @transform_10, window_bounds = array<i64: 8, 128>}]} {
    %c0 = arith.constant 0 : index
    %c0_0 = arith.constant 0 : index
    %0 = vector.load %arg1[%c0, %c0_0] : memref<8x256xbf16, #tpu.memory_space<vmem>>, vector<8x256xbf16>
    %c0_1 = arith.constant 0 : index
    %c0_2 = arith.constant 0 : index
    %1 = vector.load %arg2[%c0_1, %c0_2] : memref<8x32xf32, #tpu.memory_space<vmem>>, vector<8x32xf32>
    %c0_3 = arith.constant 0 : index
    %c0_4 = arith.constant 0 : index
    %2 = vector.load %arg3[%c0_3, %c0_4] : memref<256x128xbf16, #tpu.memory_space<vmem>>, vector<256x128xbf16>
    %cst = arith.constant dense<0.000000e+00> : vector<8x128xf32>
    %3 = tpu.matmul %0, %2, %cst {dimension_numbers = #tpu.dot_dimension_numbers<[1], [0], [0], [1], [0, 0, 1, 1], [], []>} : vector<8x256xbf16>, vector<256x128xbf16>, vector<8x128xf32> -> vector<8x128xf32>
    %c0_5 = arith.constant 0 : index
    %c0_6 = arith.constant 0 : index
    %4 = vector.load %arg4[%c0_5, %c0_6] : memref<1x128xf32, #tpu.memory_space<vmem>>, vector<1x128xf32>
    %5 = vector.broadcast %4 : vector<1x128xf32> to vector<8x128xf32>
    %6 = arith.addf %3, %5 : vector<8x128xf32>
    %cst_7 = arith.constant 0.000000e+00 : f32
    %7 = vector.broadcast %cst_7 : f32 to vector<8x128xf32>
    %8 = arith.maximumf %6, %7 : vector<8x128xf32>
    %9 = arith.truncf %8 : vector<8x128xf32> to vector<8x128xbf16>
    %c0_8 = arith.constant 0 : index
    %c0_9 = arith.constant 0 : index
    %10 = vector.load %arg5[%c0_8, %c0_9] : memref<128x256xbf16, #tpu.memory_space<vmem>>, vector<128x256xbf16>
    %cst_10 = arith.constant dense<0.000000e+00> : vector<8x256xf32>
    %11 = tpu.matmul %9, %10, %cst_10 {dimension_numbers = #tpu.dot_dimension_numbers<[1], [0], [0], [1], [0, 0, 1, 1], [], []>} : vector<8x128xbf16>, vector<128x256xbf16>, vector<8x256xf32> -> vector<8x256xf32>
    %c0_11 = arith.constant 0 : index
    %c0_12 = arith.constant 0 : index
    %12 = vector.load %arg6[%c0_11, %c0_12] : memref<1x256xf32, #tpu.memory_space<vmem>>, vector<1x256xf32>
    %13 = vector.broadcast %12 : vector<1x256xf32> to vector<8x256xf32>
    %14 = arith.addf %11, %13 : vector<8x256xf32>
    %15 = vector.extract_strided_slice %14 {offsets = [0, 0], sizes = [8, 32], strides = [1, 1]} : vector<8x256xf32> to vector<8x32xf32>
    %16 = vector.extract_strided_slice %14 {offsets = [0, 128], sizes = [8, 128], strides = [1, 1]} : vector<8x256xf32> to vector<8x128xf32>
    %cst_13 = arith.constant 5.000000e-01 : f32
    %17 = vector.broadcast %cst_13 : f32 to vector<8x32xf32>
    %18 = arith.mulf %17, %15 : vector<8x32xf32>
    %19 = math.exp %18 : vector<8x32xf32>
    %20 = arith.mulf %1, %19 : vector<8x32xf32>
    %21 = arith.truncf %20 : vector<8x32xf32> to vector<8x32xbf16>
    %c0_14 = arith.constant 0 : index
    %c0_15 = arith.constant 0 : index
    %22 = vector.load %arg7[%c0_14, %c0_15] : memref<32x128xbf16, #tpu.memory_space<vmem>>, vector<32x128xbf16>
    %cst_16 = arith.constant dense<0.000000e+00> : vector<8x128xf32>
    %23 = tpu.matmul %21, %22, %cst_16 {dimension_numbers = #tpu.dot_dimension_numbers<[1], [0], [0], [1], [0, 0, 1, 1], [], []>} : vector<8x32xbf16>, vector<32x128xbf16>, vector<8x128xf32> -> vector<8x128xf32>
    %24 = arith.addf %16, %23 : vector<8x128xf32>
    %cst_17 = arith.constant 0.000000e+00 : f32
    %25 = vector.broadcast %cst_17 : f32 to vector<8x128xf32>
    %26 = arith.maximumf %24, %25 : vector<8x128xf32>
    %27 = arith.truncf %26 : vector<8x128xf32> to vector<8x128xbf16>
    %c0_18 = arith.constant 0 : index
    %c0_19 = arith.constant 0 : index
    %28 = vector.load %arg8[%c0_18, %c0_19] : memref<128x256xbf16, #tpu.memory_space<vmem>>, vector<128x256xbf16>
    %cst_20 = arith.constant dense<0.000000e+00> : vector<8x256xf32>
    %29 = tpu.matmul %27, %28, %cst_20 {dimension_numbers = #tpu.dot_dimension_numbers<[1], [0], [0], [1], [0, 0, 1, 1], [], []>} : vector<8x128xbf16>, vector<128x256xbf16>, vector<8x256xf32> -> vector<8x256xf32>
    %c0_21 = arith.constant 0 : index
    %c0_22 = arith.constant 0 : index
    %30 = vector.load %arg9[%c0_21, %c0_22] : memref<1x256xf32, #tpu.memory_space<vmem>>, vector<1x256xf32>
    %31 = vector.broadcast %30 : vector<1x256xf32> to vector<8x256xf32>
    %32 = arith.addf %29, %31 : vector<8x256xf32>
    %33 = arith.negf %32 : vector<8x256xf32>
    %34 = math.exp %33 : vector<8x256xf32>
    %cst_23 = arith.constant 1.000000e+00 : f32
    %35 = vector.broadcast %cst_23 : f32 to vector<8x256xf32>
    %36 = arith.addf %35, %34 : vector<8x256xf32>
    %37 = arith.divf %35, %36 : vector<8x256xf32>
    %c0_24 = arith.constant 0 : index
    %c0_25 = arith.constant 0 : index
    %38 = vector.load %arg10[%c0_24, %c0_25] : memref<8x256xf32, #tpu.memory_space<vmem>>, vector<8x256xf32>
    tpu.vector_store %arg10[%c0_24, %c0_25], %37 {strides = array<i32>} : memref<8x256xf32, #tpu.memory_space<vmem>>, vector<8x256xf32>,
    %39 = vector.extract_strided_slice %14 {offsets = [0, 0], sizes = [8, 128], strides = [1, 1]} : vector<8x256xf32> to vector<8x128xf32>
    %c0_26 = arith.constant 0 : index
    %c0_27 = arith.constant 0 : index
    %40 = vector.load %arg11[%c0_26, %c0_27] : memref<8x128xf32, #tpu.memory_space<vmem>>, vector<8x128xf32>
    tpu.vector_store %arg11[%c0_26, %c0_27], %39 {strides = array<i32>} : memref<8x128xf32, #tpu.memory_space<vmem>>, vector<8x128xf32>,
    return
  }
  func.func @transform_0(%arg0: i32) -> (i32, i32) {
    %c0_i32 = arith.constant 0 : i32
    %c0_i32_0 = arith.constant 0 : i32
    return %arg0, %c0_i32 : i32, i32
  }
  func.func @transform_1(%arg0: i32) -> (i32, i32) {
    %c0_i32 = arith.constant 0 : i32
    %c0_i32_0 = arith.constant 0 : i32
    return %arg0, %c0_i32 : i32, i32
  }
  func.func @transform_2(%arg0: i32) -> (i32, i32) {
    %c0_i32 = arith.constant 0 : i32
    %c0_i32_0 = arith.constant 0 : i32
    %c0_i32_1 = arith.constant 0 : i32
    return %c0_i32, %c0_i32_0 : i32, i32
  }
  func.func @transform_3(%arg0: i32) -> (i32, i32) {
    %c0_i32 = arith.constant 0 : i32
    %c0_i32_0 = arith.constant 0 : i32
    %c0_i32_1 = arith.constant 0 : i32
    return %c0_i32, %c0_i32_0 : i32, i32
  }
  func.func @transform_4(%arg0: i32) -> (i32, i32) {
    %c0_i32 = arith.constant 0 : i32
    %c0_i32_0 = arith.constant 0 : i32
    %c0_i32_1 = arith.constant 0 : i32
    return %c0_i32, %c0_i32_0 : i32, i32
  }
  func.func @transform_5(%arg0: i32) -> (i32, i32) {
    %c0_i32 = arith.constant 0 : i32
    %c0_i32_0 = arith.constant 0 : i32
    %c0_i32_1 = arith.constant 0 : i32
    return %c0_i32, %c0_i32_0 : i32, i32
  }
  func.func @transform_6(%arg0: i32) -> (i32, i32) {
    %c0_i32 = arith.constant 0 : i32
    %c0_i32_0 = arith.constant 0 : i32
    %c0_i32_1 = arith.constant 0 : i32
    return %c0_i32, %c0_i32_0 : i32, i32
  }
  func.func @transform_7(%arg0: i32) -> (i32, i32) {
    %c0_i32 = arith.constant 0 : i32
    %c0_i32_0 = arith.constant 0 : i32
    %c0_i32_1 = arith.constant 0 : i32
    return %c0_i32, %c0_i32_0 : i32, i32
  }
  func.func @transform_8(%arg0: i32) -> (i32, i32) {
    %c0_i32 = arith.constant 0 : i32
    %c0_i32_0 = arith.constant 0 : i32
    %c0_i32_1 = arith.constant 0 : i32
    return %c0_i32, %c0_i32_0 : i32, i32
  }
  func.func @transform_9(%arg0: i32) -> (i32, i32) {
    %c0_i32 = arith.constant 0 : i32
    %c0_i32_0 = arith.constant 0 : i32
    return %arg0, %c0_i32 : i32, i32
  }
  func.func @transform_10(%arg0: i32) -> (i32, i32) {
    %c0_i32 = arith.constant 0 : i32
    %c0_i32_0 = arith.constant 0 : i32
    return %arg0, %c0_i32 : i32, i32
  }
}

</mosaic_0001>

<bundles_post_ra>
// kernel: tpu_custom_call.1
= control target key start
LH: loop header
LB: loop body
LE: loop exit
PB: predicated region body
PF: predicated region fallthrough
CT: control target
= control target key end

     0   :  { %16 = vsyncpa [#allocation3], 0  ;;  %s1177_s0 = inlined_call_operand.hbm [shape: bf16[8,256], index: 0, kind: input, shape index: {}]   ;;  %s1178_s1 = inlined_call_operand.hbm [shape: f32[8,32], index: 1, kind: input, shape index: {}]   ;;  %s1179_s2 = inlined_call_operand.hbm [shape: bf16[256,128], index: 2, kind: input, shape index: {}]   ;;  %s1180_s3 = inlined_call_operand.vmem [shape: f32[1,128], index: 3, kind: input, shape index: {}]   ;;  %s1181_s4 = inlined_call_operand.hbm [shape: bf16[128,256], index: 4, kind: input, shape index: {}]   ;;  %s1182_s5 = inlined_call_operand.vmem [shape: f32[1,256], index: 5, kind: input, shape index: {}]   ;;  %s1183_s6 = inlined_call_operand.hbm [shape: bf16[32,128], index: 6, kind: input, shape index: {}]   ;;  %s1184_s7 = inlined_call_operand.hbm [shape: bf16[128,256], index: 7, kind: input, shape index: {}]   ;;  %s1185_s8 = inlined_call_operand.vmem [shape: f32[1,256], index: 8, kind: input, shape index: {}]   ;;  %s1186_s9 = inlined_call_operand.hbm [shape: f32[8,256], index: 9, kind: output, shape index: {0}]   ;;  %s1187_s10 = inlined_call_operand.hbm [shape: f32[8,128], index: 10, kind: output, shape index: {1}]  }
   0x1   :  { %17 = vsyncpa [#allocation6], 0 }
   0x2   :  { %18 = vsyncpa [#allocation9], 0 }
   0x3   :  { %19 = vsyncpa [#allocation12], 0 }
   0x4   :  { %20 = vsyncpa [#allocation4], 0 }
   0x5   :  { %21 = vsyncpa [#allocation15], 0  ;;  %s1068_s13 = smov [#allocation5]   ;;  %s1069_s15 = smov [#allocation8]  }
   0x6   :  { %s38_s14 = sshll.u32 %s1068_s13, 4  ;;  %s61_s16 = sshll.u32 %s1069_s15, 4  ;;  %s39_s14 = int_to_ptr.vmem [resolvable:$true] %s38_s14  ;;  %s62_s16 = int_to_ptr.vmem [resolvable:$true] %s61_s16 }
   0x7   :  { %s904_s17 = scalar_lea.vmem %s39_s14, 128  ;;  %p909_p1 = scmp.lt.s32.totalorder %s39_s14, %s39_s14 }
   0x8   :  { %p905_p0 = scmp.ne.s32.totalorder %s39_s14, %s904_s17  ;;  %p910_p2 = scmp.lt.s32.totalorder %s904_s17, %s904_s17 }
   0xa   :  { %p911_p3 = por %p910_p2, %p909_p1 }
   0xc   :  { %p912_p4 = pnand %p911_p3, %p905_p0 }
   0xe   :  { %915 = shalt.err (!%p912_p4)
}
   0xf   :  { %41 = dma.hbm_to_vmem [thread:$0]  %s1178_s1, 128, %s39_s14, [#allocation6]  }
  0x10   :  { %s924_s20 = scalar_lea.vmem %s62_s16, 2048  ;;  %p929_p6 = scmp.lt.s32.totalorder %s62_s16, %s62_s16 }
  0x11   :  { %p925_p5 = scmp.ne.s32.totalorder %s62_s16, %s924_s20  ;;  %p930_p7 = scmp.lt.s32.totalorder %s924_s20, %s924_s20 }
  0x13   :  { %p931_p8 = por %p930_p7, %p929_p6 }
  0x15   :  { %p932_p9 = pnand %p931_p8, %p925_p5 }
  0x17   :  { %935 = shalt.err (!%p932_p9)
}
  0x18   :  { %s1070_s21 = smov 128   ;;  %s1071_s22 = smov 8  }
  0x19   :  { %67 = dma.hbm_to_vmem [thread:$0]  %s1181_s4, 2048, %s62_s16, [#allocation9], %s1070_s21, %s1070_s21, %s1071_s22  }
  0x1a   :  { %s1072_s25 = smov [#allocation2]   ;;  %s1073_s27 = smov [#allocation7]  }
  0x1b   :  { %s28_s26 = sshll.u32 %s1072_s25, 4  ;;  %s47_s1 = sshll.u32 %s1073_s27, 4  ;;  %s29_s26 = int_to_ptr.vmem [resolvable:$true] %s28_s26  ;;  %s48_s1 = int_to_ptr.vmem [resolvable:$true] %s47_s1 }
  0x1c   :  { %s944_s28 = scalar_lea.vmem %s29_s26, 128  ;;  %p949_p11 = scmp.lt.s32.totalorder %s29_s26, %s29_s26 }
  0x1d   :  { %p945_p10 = scmp.ne.s32.totalorder %s29_s26, %s944_s28  ;;  %p950_p12 = scmp.lt.s32.totalorder %s944_s28, %s944_s28 }
  0x1f   :  { %p951_p13 = por %p950_p12, %p949_p11 }
  0x21   :  { %p952_p0 = pnand %p951_p13, %p945_p10 }
  0x23   :  { %955 = shalt.err (!%p952_p0)
}
  0x24   :  { %31 = dma.hbm_to_vmem [thread:$0]  %s1177_s0, 128, %s29_s26, [#allocation3]  }
  0x25   :  { %s964_s11 = scalar_lea.vmem %s48_s1, 2048  ;;  %p969_p2 = scmp.lt.s32.totalorder %s48_s1, %s48_s1 }
  0x26   :  { %p965_p1 = scmp.ne.s32.totalorder %s48_s1, %s964_s11  ;;  %p970_p3 = scmp.lt.s32.totalorder %s964_s11, %s964_s11 }
  0x28   :  { %p971_p4 = por %p970_p3, %p969_p2 }
  0x2a   :  { %p972_p5 = pnand %p971_p4, %p965_p1 }
  0x2c   :  { %975 = shalt.err (!%p972_p5)
}
  0x2d   :  { %s1074_s4 = smov 64   ;;  %s1075_s12 = smov 4  }
  0x2e   :  { %53 = dma.hbm_to_vmem [thread:$0]  %s1179_s2, 2048, %s48_s1, [#allocation6], %s1074_s4, %s1074_s4, %s1075_s12  }
  0x2f   :  { %s1076_s15 = smov [#allocation10]   ;;  %s1077_s17 = smov [#allocation11]  }
  0x30   :  { %s75_s16 = sshll.u32 %s1076_s15, 4  ;;  %s87_s18 = sshll.u32 %s1077_s17, 4  ;;  %s76_s16 = int_to_ptr.vmem [resolvable:$true] %s75_s16  ;;  %s88_s18 = int_to_ptr.vmem [resolvable:$true] %s87_s18 }
  0x31   :  { %s984_s0 = scalar_lea.vmem %s76_s16, 256  ;;  %p989_p7 = scmp.lt.s32.totalorder %s76_s16, %s76_s16 }
  0x32   :  { %p985_p6 = scmp.ne.s32.totalorder %s76_s16, %s984_s0  ;;  %p990_p8 = scmp.lt.s32.totalorder %s984_s0, %s984_s0 }
  0x34   :  { %p991_p9 = por %p990_p8, %p989_p7 }
  0x36   :  { %p992_p10 = pnand %p991_p9, %p985_p6 }
  0x38   :  { %995 = shalt.err (!%p992_p10)
}
  0x39   :  { %81 = dma.hbm_to_vmem [thread:$0]  %s1183_s6, 256, %s76_s16, [#allocation9], %s1074_s4, %s1074_s4, %s1075_s12  }
  0x3a   :  { %s1004_s23 = scalar_lea.vmem %s88_s18, 2048  ;;  %p1009_p12 = scmp.lt.s32.totalorder %s88_s18, %s88_s18 }
  0x3b   :  { %p1005_p11 = scmp.ne.s32.totalorder %s88_s18, %s1004_s23  ;;  %p1010_p13 = scmp.lt.s32.totalorder %s1004_s23, %s1004_s23 }
  0x3d   :  { %p1011_p0 = por %p1010_p13, %p1009_p12 }
  0x3f   :  { %p1012_p1 = pnand %p1011_p0, %p1005_p11 }
  0x41   :  { %1015 = shalt.err (!%p1012_p1)
}
  0x42   :  { %93 = dma.hbm_to_vmem [thread:$0]  %s1184_s7, 2048, %s88_s18, [#allocation12], %s1070_s21, %s1070_s21, %s1071_s22  }
  0x43   :  { %1056 = dma.done.wait [#allocation3], 128  }
  0x44   :  { %1057 = vsyncadd [#allocation3], 4294967168 }
  0x45   :  { %1058 = dma.done.wait [#allocation6], 2176  }
  0x46   :  { %1059 = vsyncadd [#allocation6], 4294965120 }
  0x47   :  { %1060 = dma.done.wait [#allocation9], 2304  }
  0x48   :  { %1061 = vsyncadd [#allocation9], 4294964992 }
  0x49   :  { %1062 = dma.done.wait [#allocation12], 2048  }
  0x4a   :  { %1063 = vsyncadd [#allocation12], 4294965248  ;;  %v818_v0 = vld [vmem:[#allocation7 + $0x78] sm:$0xff]   ;;  %v820_v2 = vld [vmem:[#allocation7 + $0x70] sm:$0xff]   ;;  %v1078_v35 = vmov 0   ;;  %v1079_v46 = vmov 0.0   ;;  %v319_v62 = vlaneseq }
  0x4b   :  { %v819_v1 = vld [vmem:[#allocation7 + $0x38] sm:$0xff]   ;;  %770 = vmatprep.subr.bf16.mxu0 %v818_v0  ;;  %v821_v3 = vld [vmem:[#allocation7 + $0x30] sm:$0xff]   ;;  %v822_v4 = vld [vmem:[#allocation7 + $0x68] sm:$0xff]   ;;  %441 = vmatprep.mubr.bf16.mxu1 %v1078_v35  ;;  %vm1080_vm0 = vmmov 0   ;;  %vm471_vm1 = vcmask 261120  }
  0x4c   :  { %771 = vmatpush3.bf16.msra.mxu0 %v819_v1  ;;  %v823_v5 = vld [vmem:[#allocation7 + $0x28] sm:$0xff]   ;;  %v824_v6 = vld [vmem:[#allocation7 + $0x60] sm:$0xff]   ;;  %v826_v8 = vld [vmem:[#allocation7 + $0x58] sm:$0xff]   ;;  %v320_v63 = vshrl.u32 %v319_v62, 7 }
  0x4d   :  { %772 = vmatprep.subr.bf16.mxu0 %v820_v2  ;;  %v825_v7 = vld [vmem:[#allocation7 + $0x20] sm:$0xff]   ;;  %v827_v9 = vld [vmem:[#allocation7 + $0x18] sm:$0xff]   ;;  %v828_v10 = vld [vmem:[#allocation7 + $0x50] sm:$0xff]  }
  0x4e   :  { %v115_v11 = vld [vmem:[#allocation2] sm:$0xff]  ;;  %v839_v15 = vld [vmem:[#allocation8 + $0x64] ss:$8 sps:$4 sm:$0xff]   ;;  %v841_v19 = vld [vmem:[#allocation8 + $0x60] ss:$8 sps:$4 sm:$0xff]   ;;  %v321_v0 = vsub.s32 0, %v320_v63 }
  0x4f   :  { %v716_v12 = vcombine.high %v115_v11, %v115_v11  ;;  %v836_v13 = vld [vmem:[#allocation8 + $0x74] ss:$8 sps:$4 sm:$0xff]   ;;  %v838_v14 = vld [vmem:[#allocation8 + $0x70] ss:$8 sps:$4 sm:$0xff]   ;;  %v830_v17 = vld [vmem:[#allocation7 + $0x48] sm:$0xff]   ;;  %v715_v27 = vcombine.low %v115_v11, %v115_v11 }
  0x50   :  { %773 = vmatpush3.bf16.msra.mxu0 %v821_v3  ;;  %v829_v16 = vld [vmem:[#allocation7 + $0x10] sm:$0xff]   ;;  %409 = vmatprep.subr.bf16.mxu1 %v836_v13  ;;  %v831_v18 = vld [vmem:[#allocation7 + $0x8] sm:$0xff]   ;;  %v832_v20 = vld [vmem:[#allocation7 + $0x40] sm:$0xff]  }
  0x51   :  { %774 = vmatprep.subr.bf16.mxu0 %v822_v4  ;;  %291 = vmatprep.mubr.bf16.mxu0 %v716_v12  ;;  %v842_v21 = vld [vmem:[#allocation8 + $0x54] ss:$8 sps:$4 sm:$0xff]   ;;  %v844_v22 = vld [vmem:[#allocation8 + $0x50] ss:$8 sps:$4 sm:$0xff]   ;;  %v845_v23 = vld [vmem:[#allocation8 + $0x44] ss:$8 sps:$4 sm:$0xff]  }
  0x52   :  { %410 = vmatpush1.bf16.msra.mxu1 %v838_v14  ;;  %v833_v24 = vld [vmem:[#allocation7] sm:$0xff]   ;;  %v848_v26 = vld [vmem:[#allocation8 + $0x34] ss:$8 sps:$4 sm:$0xff]   ;;  %v850_v28 = vld [vmem:[#allocation8 + $0x30] ss:$8 sps:$4 sm:$0xff]  }
  0x53   :  { %411 = vmatprep.subr.bf16.mxu1 %v839_v15  ;;  %v847_v25 = vld [vmem:[#allocation8 + $0x40] ss:$8 sps:$4 sm:$0xff]   ;;  %v851_v29 = vld [vmem:[#allocation8 + $0x24] ss:$8 sps:$4 sm:$0xff]   ;;  %v854_v31 = vld [vmem:[#allocation8 + $0x14] ss:$8 sps:$4 sm:$0xff]  }
  0x54   :  { %775 = vmatpush3.bf16.msra.mxu0 %v823_v5  ;;  %v853_v30 = vld [vmem:[#allocation8 + $0x20] ss:$8 sps:$4 sm:$0xff]   ;;  %v856_v32 = vld [vmem:[#allocation8 + $0x10] ss:$8 sps:$4 sm:$0xff]   ;;  %v857_v33 = vld [vmem:[#allocation8 + $0x4] ss:$8 sps:$4 sm:$0xff]  }
  0x55   :  { %776 = vmatprep.subr.bf16.mxu0 %v824_v6  ;;  %v859_v34 = vld [vmem:[#allocation8] ss:$8 sps:$4 sm:$0xff]   ;;  %v714_v37 = vld [vmem:[%s1180_s3] ss:$0 sm:$0xff]  ;;  %v864_v49 = vld [vmem:[#allocation11 + $0x74] ss:$8 sps:$4 sm:$0xff]  }
  0x56   :  { %412 = vmatpush1.bf16.msra.mxu1 %v841_v19  ;;  %v860_v45 = vld [vmem:[#allocation10 + $0x8] sm:$0xff]   ;;  %v861_v47 = vld [vmem:[#allocation10] sm:$0xff]   ;;  %v867_v50 = vld [vmem:[#allocation11 + $0x64] ss:$8 sps:$4 sm:$0xff]  }
  0x57   :  { %413 = vmatprep.subr.bf16.mxu1 %v842_v21  ;;  %v862_v48 = vld [vmem:[#allocation11 + $0x70] ss:$8 sps:$4 sm:$0xff]   ;;  %v865_v51 = vld [vmem:[#allocation11 + $0x60] ss:$8 sps:$4 sm:$0xff]   ;;  %v870_v52 = vld [vmem:[#allocation11 + $0x54] ss:$8 sps:$4 sm:$0xff]  }
  0x58   :  { %777 = vmatpush3.bf16.msra.mxu0 %v825_v7  ;;  %v868_v53 = vld [vmem:[#allocation11 + $0x50] ss:$8 sps:$4 sm:$0xff]   ;;  %v873_v54 = vld [vmem:[#allocation11 + $0x44] ss:$8 sps:$4 sm:$0xff]   ;;  %v871_v55 = vld [vmem:[#allocation11 + $0x40] ss:$8 sps:$4 sm:$0xff]  }
  0x59   :  { %778 = vmatprep.subr.bf16.mxu0 %v826_v8  ;;  %v876_v56 = vld [vmem:[#allocation11 + $0x34] ss:$8 sps:$4 sm:$0xff]   ;;  %v874_v57 = vld [vmem:[#allocation11 + $0x30] ss:$8 sps:$4 sm:$0xff]   ;;  %v879_v58 = vld [vmem:[#allocation11 + $0x24] ss:$8 sps:$4 sm:$0xff]  }
  0x5a   :  { %414 = vmatpush1.bf16.msra.mxu1 %v844_v22  ;;  %v877_v59 = vld [vmem:[#allocation11 + $0x20] ss:$8 sps:$4 sm:$0xff]   ;;  %v882_v60 = vld [vmem:[#allocation11 + $0x14] ss:$8 sps:$4 sm:$0xff]   ;;  %v880_v61 = vld [vmem:[#allocation11 + $0x10] ss:$8 sps:$4 sm:$0xff]  }
  0x5b   :  { %415 = vmatprep.subr.bf16.mxu1 %v845_v23  ;;  %v317_v1 = vld [vmem:[%s1182_s5] sm:$0x3]  ;;  %v885_v14 = vld [vmem:[#allocation11 + $0x4] ss:$8 sps:$4 sm:$0xff]   ;;  %s1081_s5 = smov [#allocation14]  }
  0x5c   :  { %779 = vmatpush3.bf16.msra.mxu0 %v827_v9  ;;  %v322_v2 = vrot.slane %v317_v1, %v321_v0  ;;  %v883_v15 = vld [vmem:[#allocation11] ss:$8 sps:$4 sm:$0xff]   ;;  %s698_s22 = sshll.u32 %s1081_s5, 4  ;;  %s699_s22 = int_to_ptr.vmem [resolvable:$true] %s698_s22 }
  0x5d   :  { %780 = vmatprep.subr.bf16.mxu0 %v828_v10  ;;  %v116_v10 = vld [vmem:[#allocation5] sm:$0xff]  ;;  %s1016_s25 = scalar_lea.vmem %s699_s22, 128  ;;  %p1021_p3 = scmp.lt.s32.totalorder %s699_s22, %s699_s22 }
  0x5e   :  { %416 = vmatpush1.bf16.msra.mxu1 %v847_v25  ;;  %p1017_p2 = scmp.ne.s32.totalorder %s699_s22, %s1016_s25  ;;  %p1022_p4 = scmp.lt.s32.totalorder %s1016_s25, %s1016_s25 }
  0x5f   :  { %417 = vmatprep.subr.bf16.mxu1 %v848_v26 }
  0x60   :  { %781 = vmatpush3.bf16.msra.mxu0 %v829_v16  ;;  %v325_v16 = vsub.s32 1, %v320_v63  ;;  %p1023_p5 = por %p1022_p4, %p1021_p3 }
  0x61   :  { %782 = vmatprep.subr.bf16.mxu0 %v830_v17 }
  0x62   :  { %418 = vmatpush1.bf16.msra.mxu1 %v850_v28  ;;  %v326_v17 = vrot.slane %v317_v1, %v325_v16  ;;  %p1024_p6 = pnand %p1023_p5, %p1017_p2 }
  0x63   :  { %419 = vmatprep.subr.bf16.mxu1 %v851_v29 }
  0x64   :  { %783 = vmatpush3.bf16.msra.mxu0 %v831_v18 }
  0x65   :  { %784 = vmatprep.subr.bf16.mxu0 %v832_v20 }
  0x66   :  { %420 = vmatpush1.bf16.msra.mxu1 %v853_v30 }
  0x67   :  { %421 = vmatprep.subr.bf16.mxu1 %v854_v31 }
  0x68   :  { %785 = vmatpush3.bf16.msra.mxu0 %v833_v24 }
  0x69   :  { %795 = vmatprep.subr.bf16.mxu0 %v1079_v46 }
  0x6a   :  { %422 = vmatpush1.bf16.msra.mxu1 %v856_v32 }
  0x6b   :  { %292 = vmatmul.mubr.bf16.vlgmr.msra.gmra.mxu0 %v715_v27  ;;  %423 = vmatprep.subr.bf16.mxu1 %v857_v33 }
  0x6c   :  { %799 = vmatprep.mubr.msk.bf16.mxu0 %vm1080_vm0, %v1079_v46  ;;  %796 = vmatpush3.bf16.msra.mxu0 %v860_v45 }
  0x6d   :  { %797 = vmatprep.subr.bf16.mxu0 %v1079_v46 }
  0x6e   :  { %424 = vmatpush1.bf16.msra.mxu1 %v859_v34 }
  0x6f   :  { %626 = vmatprep.subr.bf16.mxu1 %v864_v49 }
  0x70   :  { %798 = vmatpush3.bf16.msra.mxu0 %v861_v47 }
 0x12b   :  { %v786_v36 = vpop.f32.mrf.mxu0 }
 0x12d   :  { %v787_v38 = vpop.f32.mrf.mxu0 }
 0x12e   :  { %v788_v39 = vadd.f32 %v787_v38, %v786_v36 }
 0x12f   :  { %v789_v40 = vpop.f32.mrf.mxu0 }
 0x130   :  { %v294_v41 = vadd.f32 %v788_v39, %v714_v37 }
 0x131   :  { %v790_v42 = vpop.f32.mrf.mxu0 }
 0x132   :  { %v299_v43 = vmax.f32 %v294_v41, 0.0 }
 0x134   :  { %v300_v44 = vpack.c.bf16 %v299_v43, %v299_v43 }
 0x136   :  { %442 = vmatmul.mubr.bf16.vlgmr.msra.gmra.mxu1 %v300_v44 }
 0x137   :  { %658 = vmatprep.mubr.bf16.mxu1 %v1078_v35  ;;  %627 = vmatpush1.bf16.msra.mxu1 %v862_v48 }
 0x138   :  { %628 = vmatprep.subr.bf16.mxu1 %v867_v50 }
 0x13b   :  { %629 = vmatpush1.bf16.msra.mxu1 %v865_v51 }
 0x13c   :  { %630 = vmatprep.subr.bf16.mxu1 %v870_v52 }
 0x13f   :  { %631 = vmatpush1.bf16.msra.mxu1 %v868_v53 }
 0x140   :  { %632 = vmatprep.subr.bf16.mxu1 %v873_v54 }
 0x143   :  { %633 = vmatpush1.bf16.msra.mxu1 %v871_v55 }
 0x144   :  { %634 = vmatprep.subr.bf16.mxu1 %v876_v56 }
 0x147   :  { %635 = vmatpush1.bf16.msra.mxu1 %v874_v57 }
 0x148   :  { %636 = vmatprep.subr.bf16.mxu1 %v879_v58 }
 0x14b   :  { %637 = vmatpush1.bf16.msra.mxu1 %v877_v59 }
 0x14c   :  { %638 = vmatprep.subr.bf16.mxu1 %v882_v60 }
 0x14f   :  { %639 = vmatpush1.bf16.msra.mxu1 %v880_v61 }
 0x150   :  { %640 = vmatprep.subr.bf16.mxu1 %v885_v14 }
 0x153   :  { %641 = vmatpush1.bf16.msra.mxu1 %v883_v15 }
 0x1f6   :  { %v443_v3 = vpop.f32.mrf.mxu1 }
 0x1f7   :  { %v444_v4 = vadd.f32 %v443_v3, %v322_v2 }
 0x1f8   :  { %v445_v5 = vpop.f32.mrf.mxu1 }
 0x1f9   :  { %v450_v6 = vmul.f32 0.5, %v444_v4  ;;  %681 = vst [vmem:[#allocation14] sm:$0xff] %v444_v4  ;;  %v446_v18 = vadd.f32 %v445_v5, %v326_v17 }
 0x1fa   :  { %v447_v7 = vpop.f32.mrf.mxu1 }
 0x1fb   :  { %v451_v8 = vmul.f32 1.442695, %v450_v6 }
 0x1fc   :  { %v448_v9 = vpop.f32.mrf.mxu1 }
 0x1fd   :  { %886 = vpow2.f32 %v451_v8 }
 0x20a   :  { %v887_v11 = vpop.eup %886 }
 0x20b   :  { %v453_v12 = vmul.f32 %v887_v11, %v116_v10 }
 0x20d   :  { %v454_v13 = vpack.c.bf16 %v453_v12, %v453_v12 }
 0x20f   :  { %800 = vmatmul.mubr.msk.bf16.vlgmr.msra.gmra.mxu0 %vm471_vm1, %v454_v13 }
 0x2cf   :  { %v509_v19 = vpop.f32.mrf.mxu0 }
 0x2d0   :  { %v515_v20 = vadd.f32 %v509_v19, %v446_v18 }
 0x2d1   :  { %v801_v21 = vpop.f32.mrf.mxu0 }
 0x2d2   :  { %v516_v22 = vmax.f32 %v515_v20, 0.0 }
 0x2d3   :  { %v512_v23 = vpop.f32.mrf.mxu0 }
 0x2d4   :  { %v517_v24 = vpack.c.bf16 %v516_v22, %v516_v22 }
 0x2d5   :  { %v802_v25 = vpop.f32.mrf.mxu0 }
 0x2d6   :  { %659 = vmatmul.mubr.bf16.vlgmr.msra.gmra.mxu1 %v517_v24 }
 0x2d7   :  { %1027 = shalt.err (!%p1024_p6)
}
 0x2d8   :  { %701 = dma.vmem_to_hbm [thread:$0]  %s699_s22, 128, %s1187_s10, [#allocation15]   ;;  %v534_v26 = vld [vmem:[%s1185_s8] sm:$0x3] }
 0x2d9   :  { %v539_v27 = vrot.slane %v534_v26, %v321_v0  ;;  %v543_v28 = vrot.slane %v534_v26, %v325_v16  ;;  %s1082_s10 = smov [#allocation13]  }
 0x2da   :  { %s688_s8 = sshll.u32 %s1082_s10, 4  ;;  %s689_s8 = int_to_ptr.vmem [resolvable:$true] %s688_s8 }
 0x2db   :  { %s1036_s29 = scalar_lea.vmem %s689_s8, 256  ;;  %p1041_p8 = scmp.lt.s32.totalorder %s689_s8, %s689_s8 }
 0x2dc   :  { %p1037_p7 = scmp.ne.s32.totalorder %s689_s8, %s1036_s29  ;;  %p1042_p9 = scmp.lt.s32.totalorder %s1036_s29, %s1036_s29 }
 0x2de   :  { %p1043_p10 = por %p1042_p9, %p1041_p8 }
 0x2e0   :  { %p1044_p11 = pnand %p1043_p10, %p1037_p7 }
 0x396   :  { %v660_v29 = vpop.f32.mrf.mxu1 }
 0x397   :  { %v661_v30 = vadd.f32 %v660_v29, %v539_v27 }
 0x398   :  { %v662_v31 = vpop.f32.mrf.mxu1 }
 0x399   :  { %v768_v32 = vmul.f32 -1.442695, %v661_v30  ;;  %v663_v33 = vadd.f32 %v662_v31, %v543_v28 }
 0x39a   :  { %v664_v34 = vpop.f32.mrf.mxu1 }
 0x39b   :  { %888 = vpow2.f32 %v768_v32  ;;  %v769_v35 = vmul.f32 -1.442695, %v663_v33 }
 0x39c   :  { %v665_v36 = vpop.f32.mrf.mxu1 }
 0x39d   :  { %890 = vpow2.f32 %v769_v35 }
 0x3a8   :  { %v889_v37 = vpop.eup %888 }
 0x3a9   :  { %v673_v38 = vadd.f32 1.0, %v889_v37 }
 0x3aa   :  { %v891_v39 = vpop.eup %890 }
 0x3ab   :  { %892 = vrcp.f32 %v673_v38  ;;  %v674_v40 = vadd.f32 1.0, %v891_v39 }
 0x3ad   :  { %894 = vrcp.f32 %v674_v40 }
 0x3b8   :  { %v893_v41 = vpop.eup %892 }
 0x3b9   :  { %679 = vst [vmem:[#allocation13] sm:$0xff] %v893_v41 }
 0x3ba   :  { %v895_v42 = vpop.eup %894 }
 0x3bb   :  { %680 = vst [vmem:[#allocation13 + $0x8] sm:$0xff] %v895_v42 }
 0x3bc   :  { %1047 = shalt.err (!%p1044_p11)
}
 0x3bd   :  { %691 = dma.vmem_to_hbm [thread:$0]  %s689_s8, 256, %s1186_s9, [#allocation4]  }
 0x3be   :  { %1064 = dma.done.wait [#allocation4], 256  }
 0x3bf   :  { %1065 = vsyncadd [#allocation4], 4294967040 }
 0x3c0   :  { %1066 = dma.done.wait [#allocation15], 128  }
 0x3c1   :  { %1067 = vsyncadd [#allocation15], 4294967168 }
 0x3c2   :  { %708 = vsyncpa [#allocation3], 1 }
 0x3c3   :  { %709 = vsyncpa [#allocation6], 1 }
 0x3c4   :  { %710 = vsyncpa [#allocation9], 1 }
 0x3c5   :  { %711 = vsyncpa [#allocation12], 1 }
 0x3c6   :  { %712 = vsyncpa [#allocation4], 1 }
 0x3c7   :  { %713 = vsyncpa [#allocation15], 1 }

</bundles_post_ra>
